<compile_context>
chip_gen: v7x
topology: tpu7x:2x2x1
jax: 0.10.0
libtpu: 0.0.40
codegen_flags: <defaults>
</compile_context>

<pallas_src>
import functools

import jax
import jax.numpy as jnp
from jax.experimental import pallas as pl
from jax.experimental.pallas import tpu as pltpu


def _round_up(x: int, m: int) -> int:
    return ((x + m - 1) // m) * m


def _fused_mlp_kernel(x_ref, *refs, num_layers: int, compute_dtype):
    """Fused MLP over one row-tile.

    x_ref : (TM, K0)               activation tile (rows x in features), f32
    refs  : (w0, b0, w1, b1, ..., w_{L-1}, b_{L-1}, o_ref)
            w_i : (Kin, Kout)      weight, transposed, compute_dtype (bf16)
            b_i : (1, Kout)        bias, f32
            o_ref : (TM, N)        output tile
    Intermediates live in vregs / compiler-managed VMEM scratch; only the
    final result is stored to HBM.
    """
    o_ref = refs[-1]
    h = x_ref[...]
    for i in range(num_layers):  # static unroll over layers
        w = refs[2 * i][...]
        b = refs[2 * i + 1][...]
        h = jnp.dot(h.astype(compute_dtype), w,
                    preferred_element_type=jnp.float32) + b
        if i < num_layers - 1:
            h = jnp.maximum(h, 0.0)
    o_ref[...] = h.astype(o_ref.dtype)


def fused_mlp(x2d, layer_params, *, compute_dtype=jnp.bfloat16, tm: int = 512):
    """Run the fused MLP on a (rows, in_dim) activation matrix.

    layer_params: list of (w_t, b2d) with w_t (in, out) in compute_dtype and
                  b2d (1, out) in float32.
    Returns (rows, out_dim) in x2d.dtype.
    """
    R, K0 = x2d.shape
    num_layers = len(layer_params)
    N = layer_params[-1][0].shape[1]

    # Row tile: multiple of 8 sublanes, default 512 (mem-bound regime: larger
    # tiles amortize the ~0.35us per-grid-step overhead), adaptive to R.
    tm = min(tm, _round_up(R, 8))
    if R > 8:
        # Keep at least 2 grid steps so the "parallel" row axis can shard
        # across both v7x TensorCores (no-op on single-TC v5e/v6e).
        tm = min(tm, _round_up(pl.cdiv(R, 2), 8))
    grid = pl.cdiv(R, tm)

    in_specs = [pl.BlockSpec((tm, K0), lambda i: (i, 0))]
    flat_args = [x2d]
    for w, b in layer_params:
        kin, kout = w.shape
        # Full-extent blocks, same block every grid step -> VMEM-resident.
        in_specs.append(pl.BlockSpec((kin, kout), lambda i: (0, 0)))
        in_specs.append(pl.BlockSpec((1, kout), lambda i: (0, 0)))
        flat_args.append(w)
        flat_args.append(b)

    # Advisory cost estimate so XLA schedules this custom call sensibly
    # relative to surrounding DETR ops.
    flops = 2 * R * sum(int(w.shape[0]) * int(w.shape[1]) for w, _ in layer_params)
    param_bytes = sum(int(w.size) * w.dtype.itemsize + int(b.size) * b.dtype.itemsize
                      for w, b in layer_params)
    bytes_accessed = (int(x2d.size) * x2d.dtype.itemsize
                      + param_bytes
                      + R * N * x2d.dtype.itemsize)
    cost = pl.CostEstimate(flops=flops, transcendentals=0,
                           bytes_accessed=bytes_accessed)

    # Rough VMEM budget: double-buffered x/out streams + resident params +
    # headroom for intermediates.  Clamp to [32 MiB, 64 MiB] so it is valid on
    # every generation (v7x physical VMEM is 64 MiB per TC).
    widths = [K0] + [int(w.shape[1]) for w, _ in layer_params]
    vmem_est = (2 * tm * K0 * x2d.dtype.itemsize
                + 2 * tm * N * x2d.dtype.itemsize
                + 2 * param_bytes
                + 6 * tm * max(widths) * 4)
    vmem_limit = int(min(64 * 1024 * 1024, max(32 * 1024 * 1024, 2 * vmem_est)))

    kernel = functools.partial(_fused_mlp_kernel, num_layers=num_layers,
                               compute_dtype=compute_dtype)
    out = pl.pallas_call(
        kernel,
        out_shape=jax.ShapeDtypeStruct((R, N), x2d.dtype),
        grid_spec=pl.GridSpec(
            grid=(grid,),
            in_specs=in_specs,
            out_specs=pl.BlockSpec((tm, N), lambda i: (i, 0)),
        ),
        compiler_params=pltpu.CompilerParams(
            dimension_semantics=("parallel",),  # independent rows -> megacore
            vmem_limit_bytes=vmem_limit,
        ),
        cost_estimate=cost,
    )(*flat_args)
    return out


class MLP:
    """JAX/Pallas equivalent of the PyTorch DETR MLP module."""

    def __init__(self, in_dim, hidden_dim, out_dim, num_layers, key,
                 compute_dtype=jnp.bfloat16):
        self.num_layers = num_layers
        self.in_dim = in_dim
        self.out_dim = out_dim
        self.compute_dtype = compute_dtype
        h = [hidden_dim] * (num_layers - 1)
        dims_in = [in_dim] + h
        dims_out = h + [out_dim]

        self.params = []         # f32 (w_t (in,out), b (out,)) for reference
        self.kernel_params = []  # (w_t bf16 (in,out), b f32 (1,out)) for kernel
        for n, k in zip(dims_in, dims_out):
            key, wk, bk = jax.random.split(key, 3)
            # Deterministic init mimicking nn.Linear's default
            # (uniform in [-1/sqrt(fan_in), 1/sqrt(fan_in)]).
            bound = 1.0 / jnp.sqrt(jnp.float32(n))
            w = jax.random.uniform(wk, (k, n), jnp.float32, -bound, bound)  # (out, in)
            b = jax.random.uniform(bk, (k,), jnp.float32, -bound, bound)
            w_t = w.T                                    # (in, out), f32
            self.params.append((w_t, b))
            self.kernel_params.append(
                (w_t.astype(compute_dtype), b.reshape(1, k).astype(jnp.float32)))

    def __call__(self, x, *, tm: int = 512):
        # Flatten arbitrary leading dims (e.g. (batch, num_queries)) into rows,
        # like nn.Linear does.  No feature/row padding: BlockSpecs use full
        # feature extents and pl.cdiv handles ragged rows.
        lead = x.shape[:-1]
        x2d = x.reshape(-1, x.shape[-1])
        out = fused_mlp(x2d, self.kernel_params,
                        compute_dtype=self.compute_dtype, tm=tm)
        return out.reshape(*lead, self.out_dim)


def mlp_reference(x, params, num_layers):
    """Pure-JAX reference (f32 params) for correctness checking."""
    for i, (w_t, b) in enumerate(params):
        x = x @ w_t + b
        if i < num_layers - 1:
            x = jnp.maximum(x, 0.0)
    return x


if __name__ == "__main__":
    key = jax.random.PRNGKey(0)
    key, xk, pk = jax.random.split(key, 3)

    # Small DETR-like shapes: (batch, num_queries, in_dim).
    batch = 2
    num_queries = 8
    in_dim = 32
    hidden_dim = 64
    out_dim = 16
    num_layers = 3

    x = jax.random.normal(xk, (batch, num_queries, in_dim), dtype=jnp.float32)

    mlp = MLP(in_dim, hidden_dim, out_dim, num_layers, pk)

    out = mlp(x)
    out = jax.block_until_ready(out)

    ref = mlp_reference(x, mlp.params, num_layers)
    assert out.shape == (batch, num_queries, out_dim)
    # bf16 MXU operands with f32 accumulation -> ~1e-2-level tolerance.
    assert jnp.allclose(out, ref, atol=2e-2, rtol=2e-2), (
        float(jnp.max(jnp.abs(out - ref))))

    print("KERNEL_OK")
</pallas_src>

<mosaic_0001>
module attributes {stable_mosaic.version = 11 : i64} {
  func.func @_fused_mlp_kernel(%arg0: i32, %arg1: memref<8x32xf32, #tpu.memory_space<vmem>>, %arg2: memref<32x64xbf16, #tpu.memory_space<vmem>>, %arg3: memref<1x64xf32, #tpu.memory_space<vmem>>, %arg4: memref<64x64xbf16, #tpu.memory_space<vmem>>, %arg5: memref<1x64xf32, #tpu.memory_space<vmem>>, %arg6: memref<64x16xbf16, #tpu.memory_space<vmem>>, %arg7: memref<1x16xf32, #tpu.memory_space<vmem>>, %arg8: memref<8x16xf32, #tpu.memory_space<vmem>>) attributes {dimension_semantics = [#tpu.dimension_semantics<parallel>], iteration_bounds = array<i64: 2>, scalar_prefetch = 0 : i64, scratch_operands = 0 : i64, tpu.core_type = #tpu.core_type<tc>, window_params = [{transform_indices = @transform_0, window_bounds = array<i64: 8, 32>}, {pipeline_mode = #tpu.pipeline_mode<synchronous>, transform_indices = @transform_1, window_bounds = array<i64: 32, 64>}, {pipeline_mode = #tpu.pipeline_mode<synchronous>, transform_indices = @transform_2, window_bounds = array<i64: 1, 64>}, {pipeline_mode = #tpu.pipeline_mode<synchronous>, transform_indices = @transform_3, window_bounds = array<i64: 64, 64>}, {pipeline_mode = #tpu.pipeline_mode<synchronous>, transform_indices = @transform_4, window_bounds = array<i64: 1, 64>}, {pipeline_mode = #tpu.pipeline_mode<synchronous>, transform_indices = @transform_5, window_bounds = array<i64: 64, 16>}, {pipeline_mode = #tpu.pipeline_mode<synchronous>, transform_indices = @transform_6, window_bounds = array<i64: 1, 16>}, {transform_indices = @transform_7, window_bounds = array<i64: 8, 16>}]} {
    %c0 = arith.constant 0 : index
    %c0_0 = arith.constant 0 : index
    %0 = vector.load %arg1[%c0, %c0_0] : memref<8x32xf32, #tpu.memory_space<vmem>>, vector<8x32xf32>
    %c0_1 = arith.constant 0 : index
    %c0_2 = arith.constant 0 : index
    %1 = vector.load %arg2[%c0_1, %c0_2] : memref<32x64xbf16, #tpu.memory_space<vmem>>, vector<32x64xbf16>
    %c0_3 = arith.constant 0 : index
    %c0_4 = arith.constant 0 : index
    %2 = vector.load %arg3[%c0_3, %c0_4] : memref<1x64xf32, #tpu.memory_space<vmem>>, vector<1x64xf32>
    %3 = arith.truncf %0 : vector<8x32xf32> to vector<8x32xbf16>
    %cst = arith.constant dense<0.000000e+00> : vector<8x64xf32>
    %4 = tpu.matmul %3, %1, %cst {dimension_numbers = #tpu.dot_dimension_numbers<[1], [0], [0], [1], [0, 0, 1, 1], [], []>} : vector<8x32xbf16>, vector<32x64xbf16>, vector<8x64xf32> -> vector<8x64xf32>
    %5 = vector.broadcast %2 : vector<1x64xf32> to vector<8x64xf32>
    %6 = arith.addf %4, %5 : vector<8x64xf32>
    %cst_5 = arith.constant 0.000000e+00 : f32
    %7 = vector.broadcast %cst_5 : f32 to vector<8x64xf32>
    %8 = arith.maximumf %6, %7 : vector<8x64xf32>
    %c0_6 = arith.constant 0 : index
    %c0_7 = arith.constant 0 : index
    %9 = vector.load %arg4[%c0_6, %c0_7] : memref<64x64xbf16, #tpu.memory_space<vmem>>, vector<64x64xbf16>
    %c0_8 = arith.constant 0 : index
    %c0_9 = arith.constant 0 : index
    %10 = vector.load %arg5[%c0_8, %c0_9] : memref<1x64xf32, #tpu.memory_space<vmem>>, vector<1x64xf32>
    %11 = arith.truncf %8 : vector<8x64xf32> to vector<8x64xbf16>
    %cst_10 = arith.constant dense<0.000000e+00> : vector<8x64xf32>
    %12 = tpu.matmul %11, %9, %cst_10 {dimension_numbers = #tpu.dot_dimension_numbers<[1], [0], [0], [1], [0, 0, 1, 1], [], []>} : vector<8x64xbf16>, vector<64x64xbf16>, vector<8x64xf32> -> vector<8x64xf32>
    %13 = vector.broadcast %10 : vector<1x64xf32> to vector<8x64xf32>
    %14 = arith.addf %12, %13 : vector<8x64xf32>
    %cst_11 = arith.constant 0.000000e+00 : f32
    %15 = vector.broadcast %cst_11 : f32 to vector<8x64xf32>
    %16 = arith.maximumf %14, %15 : vector<8x64xf32>
    %c0_12 = arith.constant 0 : index
    %c0_13 = arith.constant 0 : index
    %17 = vector.load %arg6[%c0_12, %c0_13] : memref<64x16xbf16, #tpu.memory_space<vmem>>, vector<64x16xbf16>
    %c0_14 = arith.constant 0 : index
    %c0_15 = arith.constant 0 : index
    %18 = vector.load %arg7[%c0_14, %c0_15] : memref<1x16xf32, #tpu.memory_space<vmem>>, vector<1x16xf32>
    %19 = arith.truncf %16 : vector<8x64xf32> to vector<8x64xbf16>
    %cst_16 = arith.constant dense<0.000000e+00> : vector<8x16xf32>
    %20 = tpu.matmul %19, %17, %cst_16 {dimension_numbers = #tpu.dot_dimension_numbers<[1], [0], [0], [1], [0, 0, 1, 1], [], []>} : vector<8x64xbf16>, vector<64x16xbf16>, vector<8x16xf32> -> vector<8x16xf32>
    %21 = vector.broadcast %18 : vector<1x16xf32> to vector<8x16xf32>
    %22 = arith.addf %20, %21 : vector<8x16xf32>
    %c0_17 = arith.constant 0 : index
    %c0_18 = arith.constant 0 : index
    %23 = vector.load %arg8[%c0_17, %c0_18] : memref<8x16xf32, #tpu.memory_space<vmem>>, vector<8x16xf32>
    tpu.vector_store %arg8[%c0_17, %c0_18], %22 {strides = array<i32>} : memref<8x16xf32, #tpu.memory_space<vmem>>, vector<8x16xf32>,
    return
  }
  func.func @transform_0(%arg0: i32) -> (i32, i32) {
    %c0_i32 = arith.constant 0 : i32
    %c0_i32_0 = arith.constant 0 : i32
    return %arg0, %c0_i32 : i32, i32
  }
  func.func @transform_1(%arg0: i32) -> (i32, i32) {
    %c0_i32 = arith.constant 0 : i32
    %c0_i32_0 = arith.constant 0 : i32
    %c0_i32_1 = arith.constant 0 : i32
    return %c0_i32, %c0_i32_0 : i32, i32
  }
  func.func @transform_2(%arg0: i32) -> (i32, i32) {
    %c0_i32 = arith.constant 0 : i32
    %c0_i32_0 = arith.constant 0 : i32
    %c0_i32_1 = arith.constant 0 : i32
    return %c0_i32, %c0_i32_0 : i32, i32
  }
  func.func @transform_3(%arg0: i32) -> (i32, i32) {
    %c0_i32 = arith.constant 0 : i32
    %c0_i32_0 = arith.constant 0 : i32
    %c0_i32_1 = arith.constant 0 : i32
    return %c0_i32, %c0_i32_0 : i32, i32
  }
  func.func @transform_4(%arg0: i32) -> (i32, i32) {
    %c0_i32 = arith.constant 0 : i32
    %c0_i32_0 = arith.constant 0 : i32
    %c0_i32_1 = arith.constant 0 : i32
    return %c0_i32, %c0_i32_0 : i32, i32
  }
  func.func @transform_5(%arg0: i32) -> (i32, i32) {
    %c0_i32 = arith.constant 0 : i32
    %c0_i32_0 = arith.constant 0 : i32
    %c0_i32_1 = arith.constant 0 : i32
    return %c0_i32, %c0_i32_0 : i32, i32
  }
  func.func @transform_6(%arg0: i32) -> (i32, i32) {
    %c0_i32 = arith.constant 0 : i32
    %c0_i32_0 = arith.constant 0 : i32
    %c0_i32_1 = arith.constant 0 : i32
    return %c0_i32, %c0_i32_0 : i32, i32
  }
  func.func @transform_7(%arg0: i32) -> (i32, i32) {
    %c0_i32 = arith.constant 0 : i32
    %c0_i32_0 = arith.constant 0 : i32
    return %arg0, %c0_i32 : i32, i32
  }
}

</mosaic_0001>

<bundles_post_ra>
// kernel: tpu_custom_call.1
= control target key start
LH: loop header
LB: loop body
LE: loop exit
PB: predicated region body
PF: predicated region fallthrough
CT: control target
= control target key end

     0   :  { %12 = vsyncpa [#allocation3], 0  ;;  %s1067_s0 = inlined_call_operand.vmem [shape: f32[16,32], index: 0, kind: input, shape index: {}]   ;;  %s1068_s1 = inlined_call_operand.hbm [shape: bf16[32,64], index: 1, kind: input, shape index: {}]   ;;  %s1069_s2 = inlined_call_operand.vmem [shape: f32[1,64], index: 2, kind: input, shape index: {}]   ;;  %s1070_s3 = inlined_call_operand.vmem [shape: bf16[64,64], index: 3, kind: input, shape index: {}]   ;;  %s1071_s4 = inlined_call_operand.vmem [shape: f32[1,64], index: 4, kind: input, shape index: {}]   ;;  %s1072_s5 = inlined_call_operand.vmem [shape: bf16[64,16], index: 5, kind: input, shape index: {}]   ;;  %s1073_s6 = inlined_call_operand.vmem [shape: f32[1,16], index: 6, kind: input, shape index: {}]   ;;  %s1074_s7 = inlined_call_operand.hbm [shape: f32[16,16], index: 7, kind: output, shape index: {}]  }
   0x1   :  { %13 = vsyncpa [#allocation4], 0 }
   0x2   :  { %15 = vsyncpa [#allocation4 + $0x1], 0  ;;  %s894_s24 = smov 0   ;;  %s896_s25 = smov 0  }
   0x3   :  { %s898_s26 = smov 0   ;;  %s900_s27 = smov 0  }
   0x4 LB: > { %s915_s28 = sadd.s32 4294967295, %s846_s27   ;;  %s615_s29 = sadd.s32 4294967294, %s846_s27   ;;  %s846_s27 = sphi %s900_s27, %s1090_s27   ;;  %s842_s26 = sphi %s898_s26, %s1089_s26   ;;  %s838_s25 = sphi %s896_s25, %s1088_s25   ;;  %s834_s24 = sphi %s894_s24, %s1087_s24  }
   0x5   : > { %s919_s30 = sadd.s32 1, %s846_s27   ;;  %s180_s8 = sadd.s32 1, %s842_s26 }
   0x6   : > { %s177_s9 = ssub.s32 %s846_s27, %s919_s30  ;;  %p190_p0 = scmp.ne.s32.totalorder %s842_s26, %s838_s25 }
   0x7   : > { %p178_p1 = scmp.eq.s32.totalorder %s177_s9, 0  ;;  %p191_p2 = scmp.eq.s32.totalorder %s915_s28, 1 }
   0x8   : > { %p196_p3 = scmp.ne.s32.totalorder %s838_s25, %s834_s24  ;;  %p197_p4 = scmp.eq.s32.totalorder %s615_s29, 1 }
   0x9   : > { %s930_s10 = scalar_select %p178_p1, %s842_s26, %s180_s8  }
   0xa   : > { %p932_p5 = por %p191_p2, %p190_p0  ;;  %p936_p6 = por %p197_p4, %p196_p3 }
   0xb   : > { %p616_p7 = scmp.ge.s32.totalorder %s846_s27, 1  ;;  %p204_p8 = scmp.lt.s32.totalorder %s846_s27, 3 }
   0xc   : > { %s1078_s11 = scalar_select %p932_p5, 1, 0 }
   0xd   : > { %s1079_s12 = scalar_select %p936_p6, 1, 0 }
   0xe   : > { %p1075_p9 = scmp.eq.s32.totalorder %s915_s28, 0  ;;  %p943_p10 = pnand %p616_p7, %p204_p8 }
   0xf   : > { %s848_s14 = smov [#allocation2]   ;;  %s752_s19 = scalar_lea.hbm %s1068_s1, 256 }
  0x10   : > { %s1080_s13 = scalar_select %p943_p10, 1, 0 }
  0x11   : > { %s216_s15 = sshll.u32 %s848_s14, 4  ;;  %p694_p11 = pneg %p943_p10  ;;  %s217_s15 = int_to_ptr.vmem [resolvable:$true] %s216_s15 }
  0x12   : > { %p753_p13 = scmp.ne.s32.totalorder %s1068_s1, %s752_s19  ;;  %p759_p3 = scmp.lt.u32.totalorder %s752_s19, %s1068_s1 }
  0x13   : > { %p951_p12 = pnand %p1075_p9, %p694_p11 }
  0x15   : > { %p754_p0 = pneg %p951_p12 }
  0x17   : > { %p755_p1 = pnand %p754_p0, %p753_p13 }
  0x19   : > { %p756_p2 = pneg %p755_p1 }
  0x1b   : > { %p761_p4 = pnand %p759_p3, %p756_p2 }
  0x1d   : > { %764 = shalt.err (!%p761_p4)
}
  0x1e   : > { %s765_s29 = scalar_lea.vmem %s217_s15, 256  ;;  %p773_p9 = scmp.lt.s32.totalorder %s217_s15, %s217_s15 }
  0x1f   : > { %p766_p7 = scmp.ne.s32.totalorder %s217_s15, %s765_s29  ;;  %p774_p6 = scmp.lt.s32.totalorder %s765_s29, %s765_s29 }
  0x21   : > { %p768_p8 = pnand %p766_p7, %p754_p0  ;;  %p775_p5 = por %p774_p6, %p773_p9 }
  0x23   : > { %p769_p11 = pneg %p768_p8 }
  0x25   : > { %p776_p10 = pnand %p775_p5, %p769_p11 }
  0x27   : > { %779 = shalt.err (!%p776_p10)
}
  0x28   : > { %s849_s8 = smov 64   ;;  %s850_s9 = smov 4  }
  0x29   : > { %697 = dma.hbm_to_vmem [thread:$0]  (!%p951_p12), %s1068_s1, 256, %s217_s15, [#allocation3], %s849_s8, %s849_s8, %s850_s9  }
  0x2a   : > { %p1082_p13 = scmp.ne.s32.totalorder %s1080_s13, 0 }
  0x2b   : > { %p1083_p1 = scmp.eq.s32.totalorder (!%p1082_p13), %s915_s28, 0 }
  0x2c   : > { %254 = sbr.rel (%p1082_p13) target bundleno = 726 (0x2d6), region = 48 }
  0x33   : > { %825 = dma.done.wait (%p1083_p1), [#allocation3], 256   ;;  %p1084_p0 = pmov %p1083_p1 }
  0x34   : > { %p285_p5 = scmp.lt.s32.totalorder %s915_s28, 1  ;;  %v851_v0 = vmov 0.0   ;;  %vm852_vm0 = vmmov 0   ;;  %v742_v1 = vld [vmem:[#allocation2] sm:$0xff]   ;;  %v743_v2 = vld [vmem:[#allocation2 + $0x8] sm:$0xff]   ;;  %vm315_vm1 = vcmask 261120  }
  0x35   : > { %827 = vsyncadd (%p1084_p0), [#allocation3], 4294967040  ;;  %656 = vmatprep.subr.bf16.mxu0 %v851_v0  ;;  %660 = vmatprep.mubr.msk.bf16.mxu0 %vm852_vm0, %v851_v0  ;;  %v744_v4 = vld [vmem:[%s1070_s3] sm:$0xff]   ;;  %v745_v5 = vld [vmem:[%s1070_s3 + $0x8] sm:$0xff]   ;;  %vm400_vm2 = vcmask 523264   ;;  %s282_s9 = sand.u32 1, %s838_s25  }
  0x36   : > { %s286_s16 = scalar_select %p285_p5, %s915_s28, 1  ;;  %664 = vmatprep.subr.bf16.mxu1 %v851_v0  ;;  %672 = vmatprep.mubr.msk.bf16.mxu1 %vm852_vm0, %v851_v0  ;;  %v746_v7 = vld [vmem:[%s1070_s3 + $0x10] sm:$0xff]   ;;  %v747_v8 = vld [vmem:[%s1070_s3 + $0x18] sm:$0xff]   ;;  %v748_v9 = vld [vmem:[%s1072_s5] sm:$0xff]   ;;  %vm528_vm3 = vcmask 130048  }
  0x37   : > { %657 = vmatpush3.bf16.msra.mxu0 %v742_v1  ;;  %665 = vmatpush3.bf16.msra.mxu1 %v744_v4  ;;  %v749_v10 = vld [vmem:[%s1072_s5 + $0x8] sm:$0xff]   ;;  %v623_v11 = vld [vmem:[%s1069_s2] ss:$0 sm:$0xff]  ;;  %v750_v19 = vld [vmem:[%s1072_s5 + $0x10] sm:$0xff]   ;;  %s621_s14 = sshll.u32 %s282_s9, 3  ;;  %p1085_p9 = scmp.ne.s32.totalorder %s1078_s11, 0 }
  0x38   : > { %s622_s13 = sshll.u32 %s286_s16, 3  ;;  %658 = vmatprep.subr.bf16.mxu0 %v851_v0  ;;  %666 = vmatprep.subr.bf16.mxu1 %v851_v0  ;;  %v751_v20 = vld [vmem:[%s1072_s5 + $0x18] sm:$0xff]   ;;  %v627_v21 = vld [vmem:[%s1071_s4] ss:$0 sm:$0xff]  ;;  %s284_s15 = scalar_lea.vmem [#allocation5], %s621_s14 }
  0x39   : > { %s288_s19 = scalar_lea.vmem %s1067_s0, %s622_s13  ;;  %v633_v29 = vld [vmem:[%s1073_s6] ss:$0 sm:$0xff]  ;;  %s640_s13 = sshll.u32 %s915_s28, 7 }
  0x3a   : > { %v290_v3 = vld [vmem:[%s288_s19] sm:$0xff]  ;;  %s544_s18 = sshll.u32 %s284_s15, 4  ;;  %s1025_s21 = scalar_lea.hbm %s1074_s7, %s640_s13  ;;  %s1027_s18 = int_to_ptr.vmem [resolvable:$true] %s544_s18 }
  0x3b   : > { %v296_v6 = vpack.c.bf16 %v290_v3, %v290_v3  ;;  %659 = vmatpush3.bf16.msra.mxu0 %v743_v2  ;;  %667 = vmatpush3.bf16.msra.mxu1 %v745_v5  ;;  %s531_s28 = scalar_lea.sflag [#allocation4], %s282_s9  ;;  %s780_s22 = scalar_lea.vmem %s1027_s18, 128 }
  0x3c   : > { %676 = vmatprep.subr.bf16.mxu0 %v851_v0  ;;  %668 = vmatprep.subr.bf16.mxu1 %v851_v0  ;;  %p781_p6 = scmp.ne.s32.totalorder %s1027_s18, %s780_s22  ;;  %s853_s23 = smov [#allocation5]  }
  0x3d   : > { %s784_s29 = sshll.u32 %s853_s23, 4  ;;  %s785_s29 = int_to_ptr.vmem [resolvable:$false] %s784_s29 }
  0x3e   : > { %661 = vmatmul.mubr.msk.bf16.vlgmr.msra.gmra.mrb[0].mxu0 %vm315_vm1, %v296_v6  ;;  %p782_p10 = pnand %p781_p6, %p1085_p9  ;;  %s786_s8 = scalar_lea.vmem %s785_s29, 256 }
  0x3f   : > { %684 = vmatprep.mubr.msk.bf16.mxu0 %vm852_vm0, %v851_v0  ;;  %669 = vmatpush3.bf16.msra.mxu1 %v746_v7  ;;  %p787_p2 = scmp.lt.s32.totalorder %s1027_s18, %s785_s29  ;;  %p788_p3 = scmp.lt.s32.totalorder %s786_s8, %s780_s22 }
  0x40   : > { %670 = vmatprep.subr.bf16.mxu1 %v851_v0  ;;  %677 = vmatpush3.bf16.msra.mxu0 %v748_v9  ;;  %p783_p12 = pneg %p782_p10 }
  0x41   : > { %678 = vmatprep.subr.bf16.mxu0 %v851_v0  ;;  %p789_p4 = por %p788_p3, %p787_p2 }
  0x43   : > { %671 = vmatpush3.bf16.msra.mxu1 %v747_v8  ;;  %p790_p7 = pnand %p789_p4, %p783_p12 }
  0x44   : > { %679 = vmatpush3.bf16.msra.mxu0 %v749_v10 }
  0x45   : > { %680 = vmatprep.subr.bf16.mxu0 %v851_v0 }
  0x48   : > { %681 = vmatpush3.bf16.msra.mxu0 %v750_v19 }
  0x49   : > { %682 = vmatprep.subr.bf16.mxu0 %v851_v0 }
  0x4c   : > { %683 = vmatpush3.bf16.msra.mxu0 %v751_v20 }
 0x111   : > { %v353_v12 = vpop.f32.mrb[0].mxu0 }
 0x112   : > { %v354_v13 = vadd.f32 %v623_v11, %v353_v12  ;;  %v662_v14 = vpop.f32.mrb[1].mxu0 }
 0x113   : > { %v356_v15 = vpop.f32.mrb[2].mxu0 }
 0x114   : > { %v359_v16 = vmax.f32 %v354_v13, 0.0  ;;  %v663_v17 = vpop.f32.mrb[3].mxu0 }
 0x116   : > { %v369_v18 = vpack.c.bf16 %v359_v16, %v359_v16 }
 0x118   : > { %673 = vmatmul.mubr.msk.bf16.vlgmr.msra.gmra.mrb[0].mxu1 %vm400_vm2, %v369_v18 }
 0x1eb   : > { %v438_v22 = vpop.f32.mrb[0].mxu1 }
 0x1ec   : > { %v439_v23 = vadd.f32 %v627_v21, %v438_v22  ;;  %v674_v24 = vpop.f32.mrb[1].mxu1 }
 0x1ed   : > { %v441_v25 = vpop.f32.mrb[2].mxu1 }
 0x1ee   : > { %v444_v26 = vmax.f32 %v439_v23, 0.0  ;;  %v675_v27 = vpop.f32.mrb[3].mxu1 }
 0x1f0   : > { %v454_v28 = vpack.c.bf16 %v444_v26, %v444_v26 }
 0x1f2   : > { %685 = vmatmul.mubr.msk.bf16.vlgmr.msra.gmra.mrb[4].mxu0 %vm400_vm2, %v454_v28 }
 0x2c5   : > { %v522_v30 = vpop.f32.mrb[4].mxu0 }
 0x2c6   : > { %v523_v31 = vadd.f32 %v633_v29, %v522_v30  ;;  %v686_v32 = vpop.f32.mrb[5].mxu0 }
 0x2c7   : > { %v525_v33 = vpop.f32.mrb[6].mxu0 }
 0x2c8   : > { %v687_v34 = vpop.f32.mrb[7].mxu0  ;;  %529 = vst.msk [vmem:[%s284_s15] sm:$0xff] %vm528_vm3, %v523_v31 }
 0x2c9   : > { %793 = shalt.err (!%p790_p7)
}
 0x2ca   : > { %s794_s9 = scalar_lea.hbm %s1025_s21, 128  ;;  %s798_s16 = scalar_lea.hbm %s1074_s7, 256 }
 0x2cb   : > { %p795_p8 = scmp.ne.s32.totalorder %s1025_s21, %s794_s9  ;;  %p799_p1 = scmp.lt.u32.totalorder %s1025_s21, %s1074_s7 }
 0x2cc   : > { %p800_p0 = scmp.lt.u32.totalorder %s798_s16, %s794_s9  ;;  %p802_p6 = scmp.lt.u32.totalorder %s794_s9, %s1025_s21 }
 0x2cd   : > { %p796_p11 = pnand %p795_p8, %p1085_p9 }
 0x2ce   : > { %p801_p5 = por %p800_p0, %p799_p1 }
 0x2cf   : > { %p797_p13 = pneg %p796_p11 }
 0x2d0   : > { %p803_p10 = por %p802_p6, %p801_p5 }
 0x2d2   : > { %p804_p12 = pnand %p803_p10, %p797_p13 }
 0x2d4   : > { %807 = shalt.err (!%p804_p12)
}
 0x2d5   : > { %692 = dma.vmem_to_hbm [thread:$0]  (%p1085_p9), %s1027_s18, 128, %s1025_s21, %s531_s28  }
 0x2d6 PF: > { %p704_p2 = scmp.ge.s32.totalorder %s846_s27, 2  ;;  %s556_s19 = sand.u32 1, %s834_s24  }
 0x2d7   : > { %p1086_p3 = scmp.ne.s32.totalorder %s1079_s12, 0  ;;  %s557_s20 = scalar_lea.sflag [#allocation4], %s556_s19 }
 0x2d9   : > { %p699_p4 = pnand %p704_p2, %p1086_p3 }
 0x2db   : > { %829 = dma.done.wait (!%p699_p4), %s557_s20, 128  }
 0x2dc   : > { %831 = vsyncadd (!%p699_p4), %s557_s20, 4294967168  ;;  %p18_p7 = scmp.ge.s32.totalorder %s919_s30, 4   ;;  %s1087_s24 = smov %s838_s25 }
 0x2dd   : > { %s1088_s25 = smov %s842_s26  ;;  %s1089_s26 = smov %s930_s10 }
 0x2de   : > { %s1090_s27 = smov %s919_s30  ;;  %20 = sbr.rel (!%p18_p7) target bundleno = 4 (0x4), region = 88 }
 0x2e5   :  { %562 = vsyncpa [#allocation3], 1 }
 0x2e6   :  { %564 = vsyncpa [#allocation3 + $0x1], 1 }
 0x2e7   :  { %565 = vsyncpa [#allocation4], 1 }
 0x2e8   :  { %567 = vsyncpa [#allocation4 + $0x1], 1 }

</bundles_post_ra>
